<compile_context>
chip_gen: v6e
topology: v6e:2x2x1
jax: 0.10.0
libtpu: 0.0.40
codegen_flags: <defaults>
</compile_context>

<pallas_src>
import jax
import jax.numpy as jnp
from jax.experimental import pallas as pl
from jax.experimental.pallas import tpu as pltpu


# ----------------------------------------------------------------------------
# Shared bf16-operand / fp32-accumulate dot (used by kernels AND reference)
# ----------------------------------------------------------------------------
def _bdot(a, b):
    return jnp.dot(a.astype(jnp.bfloat16), b.astype(jnp.bfloat16),
                   preferred_element_type=jnp.float32)


# ----------------------------------------------------------------------------
# Kernels
# ----------------------------------------------------------------------------
def gin_conv_kernel(a_ref, x_ref, w1_ref, b1_ref, w2_ref, b2_ref, h_ref):
    """relu( MLP( A_tile @ X ) ) for one row tile of nodes.

    a_ref : (TM, NPc) bf16   row tile of A_hat (pipelined over the grid)
    x_ref : (NPc, Fin) bf16  full node features (resident)
    w*    : bf16 weights, b* : fp32 (1, Hp) biases (resident)
    h_ref : (TM, Hp) bf16    output row tile
    """
    agg = _bdot(a_ref[...], x_ref[...])                       # fp32 acc
    h1 = jnp.maximum(_bdot(agg, w1_ref[...]) + b1_ref[...], 0.0)
    h = jnp.maximum(_bdot(h1, w2_ref[...]) + b2_ref[...], 0.0)
    h_ref[...] = h.astype(h_ref.dtype)


def gin_conv_lin_kernel(a_ref, h_ref, w1_ref, b1_ref, w2_ref, b2_ref,
                        wl_ref, bl_ref, o_ref):
    """relu( MLP( A_tile @ H ) ) followed by the final Linear, one row tile."""
    agg = _bdot(a_ref[...], h_ref[...])
    h1 = jnp.maximum(_bdot(agg, w1_ref[...]) + b1_ref[...], 0.0)
    h2 = jnp.maximum(_bdot(h1, w2_ref[...]) + b2_ref[...], 0.0)
    o_ref[...] = (_bdot(h2, wl_ref[...]) + bl_ref[...]).astype(o_ref.dtype)


# ----------------------------------------------------------------------------
# Helpers
# ----------------------------------------------------------------------------
def _round_up(v, m):
    return ((v + m - 1) // m) * m


def _pad2(m, rows, cols):
    out = jnp.zeros((rows, cols), m.dtype)
    return out.at[: m.shape[0], : m.shape[1]].set(m)


def _nbytes(a):
    return int(a.size) * a.dtype.itemsize


def _choose_row_tile(n, npc):
    """Row (node) tile: multiple of 16 (bf16 sublane granule).  Sized so a
    double-buffered bf16 A row-tile stays around ~8 MiB total, which fits
    v7x's 64 MiB physical VMEM and v5e's 16 MiB default scoped VMEM with
    headroom.  Returns (TILE_M, padded_rows)."""
    mp16 = _round_up(max(n, 16), 16)
    if mp16 <= 512:
        return mp16, mp16                       # single tile, minimal padding
    budget_rows = ((4 << 20) // (npc * 2)) // 16 * 16    # 4 MiB per A buffer
    tm = max(16, min(512, budget_rows))
    return tm, _round_up(n, tm)


def _vmem_limit_bytes(tile_bytes, resident_bytes):
    """Explicit scoped-VMEM request: double-buffered tiles + resident operands
    + slack, clamped to fit every generation (v7x: 64 MiB per TensorCore)."""
    need = 2 * tile_bytes + resident_bytes + (2 << 20)
    return int(min(max(need, 16 << 20), 60 << 20))


def build_shifted_adjacency(edge_index, num_nodes, eps=0.0):
    """Dense message-passing operator A_hat[dst, src] += 1, plus (1+eps) I.
    Built ONCE per graph (hoisted out of the forward) -- cache when static.
    Kept in fp32 here; cast to bf16 at the pallas_call boundary (edge counts
    up to 256 and eps=0 are bf16-exact)."""
    src, dst = edge_index[0], edge_index[1]
    a = jnp.zeros((num_nodes, num_nodes), jnp.float32).at[dst, src].add(1.0)
    return a + (1.0 + eps) * jnp.eye(num_nodes, dtype=jnp.float32)


# ----------------------------------------------------------------------------
# Forward: conv1 (call 1) -> conv2 + lin (call 2), row-tiled over nodes
# ----------------------------------------------------------------------------
def gin_forward(params, x, a_hat):
    n, c_in = x.shape
    hid = params["c1_w1"].shape[1]
    out_c = params["lin_w"].shape[1]

    # Lane (last) dims padded to 128 -> lane-dense matmuls + unmasked stores.
    # Node/row axis padded only to the row tile (multiple of 16), not 128.
    NPc = _round_up(n, 128)          # A columns == X/H rows (contracting dim)
    CIp = _round_up(c_in, 128)
    Hp = _round_up(hid, 128)
    COp = _round_up(out_c, 128)
    TM, MP = _choose_row_tile(n, NPc)
    grid = (MP // TM,)

    bf16 = jnp.bfloat16
    a_p = _pad2(a_hat, MP, NPc).astype(bf16)
    x_p = _pad2(x, NPc, CIp).astype(bf16)

    w11 = _pad2(params["c1_w1"], CIp, Hp).astype(bf16)
    b11 = _pad2(params["c1_b1"], 1, Hp)
    w12 = _pad2(params["c1_w2"], Hp, Hp).astype(bf16)
    b12 = _pad2(params["c1_b2"], 1, Hp)
    w21 = _pad2(params["c2_w1"], Hp, Hp).astype(bf16)
    b21 = _pad2(params["c2_b1"], 1, Hp)
    w22 = _pad2(params["c2_w2"], Hp, Hp).astype(bf16)
    b22 = _pad2(params["c2_b2"], 1, Hp)
    wl = _pad2(params["lin_w"], Hp, COp).astype(bf16)
    bl = _pad2(params["lin_b"], 1, COp)

    def _row_tiled(cols):
        return pl.BlockSpec((TM, cols), lambda i: (i, 0))

    def _resident(arr):
        return pl.BlockSpec(arr.shape, lambda i: (0, 0))

    # ---------------- call 1: conv1 -> H (bf16, row-tiled) ------------------
    res1 = (x_p, w11, b11, w12, b12)
    flops1 = 2 * MP * (NPc * CIp + CIp * Hp + Hp * Hp)
    bytes1 = _nbytes(a_p) + sum(_nbytes(r) for r in res1) + MP * Hp * 2
    vmem1 = _vmem_limit_bytes(TM * NPc * 2 + TM * Hp * 2,
                              sum(_nbytes(r) for r in res1))

    h_p = pl.pallas_call(
        gin_conv_kernel,
        out_shape=jax.ShapeDtypeStruct((MP, Hp), bf16),
        grid=grid,
        in_specs=[_row_tiled(NPc), _resident(x_p), _resident(w11),
                  _resident(b11), _resident(w12), _resident(b12)],
        out_specs=_row_tiled(Hp),
        compiler_params=pltpu.CompilerParams(
            dimension_semantics=("parallel",), vmem_limit_bytes=vmem1),
        cost_estimate=pl.CostEstimate(flops=flops1, transcendentals=0,
                                      bytes_accessed=bytes1),
    )(a_p, x_p, w11, b11, w12, b12)

    # H enters call 2 as the contracting operand: give it NPc rows.
    # (Padded-node rows/cols of A are zero, so extra/garbage rows are inert.)
    if MP >= NPc:
        h_in = h_p[:NPc]
    else:
        h_in = jnp.pad(h_p, ((0, NPc - MP), (0, 0)))

    # ---------------- call 2: conv2 + final Linear -> out (fp32) ------------
    res2 = (h_in, w21, b21, w22, b22, wl, bl)
    flops2 = 2 * MP * (NPc * Hp + 2 * Hp * Hp + Hp * COp)
    bytes2 = _nbytes(a_p) + sum(_nbytes(r) for r in res2) + MP * COp * 4
    vmem2 = _vmem_limit_bytes(TM * NPc * 2 + TM * COp * 4,
                              sum(_nbytes(r) for r in res2))

    out_p = pl.pallas_call(
        gin_conv_lin_kernel,
        out_shape=jax.ShapeDtypeStruct((MP, COp), jnp.float32),
        grid=grid,
        in_specs=[_row_tiled(NPc), _resident(h_in), _resident(w21),
                  _resident(b21), _resident(w22), _resident(b22),
                  _resident(wl), _resident(bl)],
        out_specs=_row_tiled(COp),
        compiler_params=pltpu.CompilerParams(
            dimension_semantics=("parallel",), vmem_limit_bytes=vmem2),
        cost_estimate=pl.CostEstimate(flops=flops2, transcendentals=0,
                                      bytes_accessed=bytes2),
    )(a_p, h_in, w21, b21, w22, b22, wl, bl)

    return out_p[:n, :out_c]


# ----------------------------------------------------------------------------
# Deterministic parameter init (shapes match the torch module's __init__)
# ----------------------------------------------------------------------------
def init_params(key, in_channels, hidden_channels, out_channels):
    ks = jax.random.split(key, 10)

    def lin_init(kw, kb, fan_in, fan_out):
        # torch.nn.Linear default init: U(-1/sqrt(fan_in), 1/sqrt(fan_in)).
        bound = 1.0 / (fan_in ** 0.5)
        w = jax.random.uniform(kw, (fan_in, fan_out), jnp.float32, -bound, bound)
        b = jax.random.uniform(kb, (1, fan_out), jnp.float32, -bound, bound)
        return w, b

    p = {}
    p["c1_w1"], p["c1_b1"] = lin_init(ks[0], ks[1], in_channels, hidden_channels)
    p["c1_w2"], p["c1_b2"] = lin_init(ks[2], ks[3], hidden_channels, hidden_channels)
    p["c2_w1"], p["c2_b1"] = lin_init(ks[4], ks[5], hidden_channels, hidden_channels)
    p["c2_w2"], p["c2_b2"] = lin_init(ks[6], ks[7], hidden_channels, hidden_channels)
    p["lin_w"], p["lin_b"] = lin_init(ks[8], ks[9], hidden_channels, out_channels)
    return p


if __name__ == "__main__":
    key = jax.random.PRNGKey(0)
    k_x, k_e, k_p = jax.random.split(key, 3)

    N, IN_C, HID, OUT_C, E = 16, 4, 32, 8, 48

    x = jax.random.normal(k_x, (N, IN_C), jnp.float32)
    edge_index = jax.random.randint(k_e, (2, E), 0, N, dtype=jnp.int32)
    params = init_params(k_p, IN_C, HID, OUT_C)

    # Graph operator built once (hoist / cache for static graphs).
    a_hat = build_shifted_adjacency(edge_index, N, eps=0.0)

    out = jax.jit(gin_forward)(params, x, a_hat)
    jax.block_until_ready(out)
    assert out.shape == (N, OUT_C)

    # Reference 1: same math with the same bf16-operand / fp32-accum dots.
    def ref_bf16(params, x, a_hat):
        def conv(h, w1, b1, w2, b2):
            agg = _bdot(a_hat, h)
            h1 = jnp.maximum(_bdot(agg, w1) + b1, 0.0)
            return jnp.maximum(_bdot(h1, w2) + b2, 0.0)

        h = conv(x, params["c1_w1"], params["c1_b1"], params["c1_w2"], params["c1_b2"])
        h = h.astype(jnp.bfloat16).astype(jnp.float32)   # kernel stores H as bf16
        h = conv(h, params["c2_w1"], params["c2_b1"], params["c2_w2"], params["c2_b2"])
        return _bdot(h, params["lin_w"]) + params["lin_b"]

    # Reference 2: pure fp32 math (loose tolerance, sanity of the bf16 cast).
    def ref_f32(params, x, a_hat):
        def conv(h, w1, b1, w2, b2):
            agg = a_hat @ h
            h1 = jnp.maximum(agg @ w1 + b1, 0.0)
            return jnp.maximum(h1 @ w2 + b2, 0.0)

        h = conv(x, params["c1_w1"], params["c1_b1"], params["c1_w2"], params["c1_b2"])
        h = conv(h, params["c2_w1"], params["c2_b1"], params["c2_w2"], params["c2_b2"])
        return h @ params["lin_w"] + params["lin_b"]

    exp_bf16 = ref_bf16(params, x, a_hat)
    exp_f32 = ref_f32(params, x, a_hat)
    assert jnp.allclose(out, exp_bf16, atol=3e-3, rtol=3e-3), "bf16-path mismatch"
    assert jnp.allclose(out, exp_f32, atol=1e-1, rtol=1e-1), "fp32 sanity mismatch"

    print("KERNEL_OK")
</pallas_src>

<mosaic_0001>
module attributes {stable_mosaic.version = 11 : i64} {
  func.func @gin_conv_kernel(%arg0: i32, %arg1: memref<16x128xbf16, #tpu.memory_space<vmem>>, %arg2: memref<128x128xbf16, #tpu.memory_space<vmem>>, %arg3: memref<128x128xbf16, #tpu.memory_space<vmem>>, %arg4: memref<1x128xf32, #tpu.memory_space<vmem>>, %arg5: memref<128x128xbf16, #tpu.memory_space<vmem>>, %arg6: memref<1x128xf32, #tpu.memory_space<vmem>>, %arg7: memref<16x128xbf16, #tpu.memory_space<vmem>>) attributes {dimension_semantics = [#tpu.dimension_semantics<parallel>], iteration_bounds = array<i64: 1>, scalar_prefetch = 0 : i64, scratch_operands = 0 : i64, tpu.core_type = #tpu.core_type<tc>, window_params = [{transform_indices = @transform_0, window_bounds = array<i64: 16, 128>}, {pipeline_mode = #tpu.pipeline_mode<synchronous>, transform_indices = @transform_1, window_bounds = array<i64: 128, 128>}, {pipeline_mode = #tpu.pipeline_mode<synchronous>, transform_indices = @transform_2, window_bounds = array<i64: 128, 128>}, {pipeline_mode = #tpu.pipeline_mode<synchronous>, transform_indices = @transform_3, window_bounds = array<i64: 1, 128>}, {pipeline_mode = #tpu.pipeline_mode<synchronous>, transform_indices = @transform_4, window_bounds = array<i64: 128, 128>}, {pipeline_mode = #tpu.pipeline_mode<synchronous>, transform_indices = @transform_5, window_bounds = array<i64: 1, 128>}, {transform_indices = @transform_6, window_bounds = array<i64: 16, 128>}]} {
    %c0 = arith.constant 0 : index
    %c0_0 = arith.constant 0 : index
    %0 = vector.load %arg1[%c0, %c0_0] : memref<16x128xbf16, #tpu.memory_space<vmem>>, vector<16x128xbf16>
    %c0_1 = arith.constant 0 : index
    %c0_2 = arith.constant 0 : index
    %1 = vector.load %arg2[%c0_1, %c0_2] : memref<128x128xbf16, #tpu.memory_space<vmem>>, vector<128x128xbf16>
    %cst = arith.constant dense<0.000000e+00> : vector<16x128xf32>
    %2 = tpu.matmul %0, %1, %cst {dimension_numbers = #tpu.dot_dimension_numbers<[1], [0], [0], [1], [0, 0, 1, 1], [], []>} : vector<16x128xbf16>, vector<128x128xbf16>, vector<16x128xf32> -> vector<16x128xf32>
    %c0_3 = arith.constant 0 : index
    %c0_4 = arith.constant 0 : index
    %3 = vector.load %arg3[%c0_3, %c0_4] : memref<128x128xbf16, #tpu.memory_space<vmem>>, vector<128x128xbf16>
    %4 = arith.truncf %2 : vector<16x128xf32> to vector<16x128xbf16>
    %cst_5 = arith.constant dense<0.000000e+00> : vector<16x128xf32>
    %5 = tpu.matmul %4, %3, %cst_5 {dimension_numbers = #tpu.dot_dimension_numbers<[1], [0], [0], [1], [0, 0, 1, 1], [], []>} : vector<16x128xbf16>, vector<128x128xbf16>, vector<16x128xf32> -> vector<16x128xf32>
    %c0_6 = arith.constant 0 : index
    %c0_7 = arith.constant 0 : index
    %6 = vector.load %arg4[%c0_6, %c0_7] : memref<1x128xf32, #tpu.memory_space<vmem>>, vector<1x128xf32>
    %7 = vector.broadcast %6 : vector<1x128xf32> to vector<16x128xf32>
    %8 = arith.addf %5, %7 : vector<16x128xf32>
    %cst_8 = arith.constant 0.000000e+00 : f32
    %9 = vector.broadcast %cst_8 : f32 to vector<16x128xf32>
    %10 = arith.maximumf %8, %9 : vector<16x128xf32>
    %c0_9 = arith.constant 0 : index
    %c0_10 = arith.constant 0 : index
    %11 = vector.load %arg5[%c0_9, %c0_10] : memref<128x128xbf16, #tpu.memory_space<vmem>>, vector<128x128xbf16>
    %12 = arith.truncf %10 : vector<16x128xf32> to vector<16x128xbf16>
    %cst_11 = arith.constant dense<0.000000e+00> : vector<16x128xf32>
    %13 = tpu.matmul %12, %11, %cst_11 {dimension_numbers = #tpu.dot_dimension_numbers<[1], [0], [0], [1], [0, 0, 1, 1], [], []>} : vector<16x128xbf16>, vector<128x128xbf16>, vector<16x128xf32> -> vector<16x128xf32>
    %c0_12 = arith.constant 0 : index
    %c0_13 = arith.constant 0 : index
    %14 = vector.load %arg6[%c0_12, %c0_13] : memref<1x128xf32, #tpu.memory_space<vmem>>, vector<1x128xf32>
    %15 = vector.broadcast %14 : vector<1x128xf32> to vector<16x128xf32>
    %16 = arith.addf %13, %15 : vector<16x128xf32>
    %cst_14 = arith.constant 0.000000e+00 : f32
    %17 = vector.broadcast %cst_14 : f32 to vector<16x128xf32>
    %18 = arith.maximumf %16, %17 : vector<16x128xf32>
    %19 = arith.truncf %18 : vector<16x128xf32> to vector<16x128xbf16>
    %c0_15 = arith.constant 0 : index
    %c0_16 = arith.constant 0 : index
    %20 = vector.load %arg7[%c0_15, %c0_16] : memref<16x128xbf16, #tpu.memory_space<vmem>>, vector<16x128xbf16>
    tpu.vector_store %arg7[%c0_15, %c0_16], %19 {strides = array<i32>} : memref<16x128xbf16, #tpu.memory_space<vmem>>, vector<16x128xbf16>,
    return
  }
  func.func @transform_0(%arg0: i32) -> (i32, i32) {
    %c0_i32 = arith.constant 0 : i32
    %c0_i32_0 = arith.constant 0 : i32
    return %arg0, %c0_i32 : i32, i32
  }
  func.func @transform_1(%arg0: i32) -> (i32, i32) {
    %c0_i32 = arith.constant 0 : i32
    %c0_i32_0 = arith.constant 0 : i32
    %c0_i32_1 = arith.constant 0 : i32
    return %c0_i32, %c0_i32_0 : i32, i32
  }
  func.func @transform_2(%arg0: i32) -> (i32, i32) {
    %c0_i32 = arith.constant 0 : i32
    %c0_i32_0 = arith.constant 0 : i32
    %c0_i32_1 = arith.constant 0 : i32
    return %c0_i32, %c0_i32_0 : i32, i32
  }
  func.func @transform_3(%arg0: i32) -> (i32, i32) {
    %c0_i32 = arith.constant 0 : i32
    %c0_i32_0 = arith.constant 0 : i32
    %c0_i32_1 = arith.constant 0 : i32
    return %c0_i32, %c0_i32_0 : i32, i32
  }
  func.func @transform_4(%arg0: i32) -> (i32, i32) {
    %c0_i32 = arith.constant 0 : i32
    %c0_i32_0 = arith.constant 0 : i32
    %c0_i32_1 = arith.constant 0 : i32
    return %c0_i32, %c0_i32_0 : i32, i32
  }
  func.func @transform_5(%arg0: i32) -> (i32, i32) {
    %c0_i32 = arith.constant 0 : i32
    %c0_i32_0 = arith.constant 0 : i32
    %c0_i32_1 = arith.constant 0 : i32
    return %c0_i32, %c0_i32_0 : i32, i32
  }
  func.func @transform_6(%arg0: i32) -> (i32, i32) {
    %c0_i32 = arith.constant 0 : i32
    %c0_i32_0 = arith.constant 0 : i32
    return %arg0, %c0_i32 : i32, i32
  }
}

module attributes {stable_mosaic.version = 11 : i64} {
  func.func @gin_conv_lin_kernel(%arg0: i32, %arg1: memref<16x128xbf16, #tpu.memory_space<vmem>>, %arg2: memref<128x128xbf16, #tpu.memory_space<vmem>>, %arg3: memref<128x128xbf16, #tpu.memory_space<vmem>>, %arg4: memref<1x128xf32, #tpu.memory_space<vmem>>, %arg5: memref<128x128xbf16, #tpu.memory_space<vmem>>, %arg6: memref<1x128xf32, #tpu.memory_space<vmem>>, %arg7: memref<128x128xbf16, #tpu.memory_space<vmem>>, %arg8: memref<1x128xf32, #tpu.memory_space<vmem>>, %arg9: memref<16x128xf32, #tpu.memory_space<vmem>>) attributes {dimension_semantics = [#tpu.dimension_semantics<parallel>], iteration_bounds = array<i64: 1>, scalar_prefetch = 0 : i64, scratch_operands = 0 : i64, tpu.core_type = #tpu.core_type<tc>, window_params = [{transform_indices = @transform_0, window_bounds = array<i64: 16, 128>}, {pipeline_mode = #tpu.pipeline_mode<synchronous>, transform_indices = @transform_1, window_bounds = array<i64: 128, 128>}, {pipeline_mode = #tpu.pipeline_mode<synchronous>, transform_indices = @transform_2, window_bounds = array<i64: 128, 128>}, {pipeline_mode = #tpu.pipeline_mode<synchronous>, transform_indices = @transform_3, window_bounds = array<i64: 1, 128>}, {pipeline_mode = #tpu.pipeline_mode<synchronous>, transform_indices = @transform_4, window_bounds = array<i64: 128, 128>}, {pipeline_mode = #tpu.pipeline_mode<synchronous>, transform_indices = @transform_5, window_bounds = array<i64: 1, 128>}, {pipeline_mode = #tpu.pipeline_mode<synchronous>, transform_indices = @transform_6, window_bounds = array<i64: 128, 128>}, {pipeline_mode = #tpu.pipeline_mode<synchronous>, transform_indices = @transform_7, window_bounds = array<i64: 1, 128>}, {transform_indices = @transform_8, window_bounds = array<i64: 16, 128>}]} {
    %c0 = arith.constant 0 : index
    %c0_0 = arith.constant 0 : index
    %0 = vector.load %arg1[%c0, %c0_0] : memref<16x128xbf16, #tpu.memory_space<vmem>>, vector<16x128xbf16>
    %c0_1 = arith.constant 0 : index
    %c0_2 = arith.constant 0 : index
    %1 = vector.load %arg2[%c0_1, %c0_2] : memref<128x128xbf16, #tpu.memory_space<vmem>>, vector<128x128xbf16>
    %cst = arith.constant dense<0.000000e+00> : vector<16x128xf32>
    %2 = tpu.matmul %0, %1, %cst {dimension_numbers = #tpu.dot_dimension_numbers<[1], [0], [0], [1], [0, 0, 1, 1], [], []>} : vector<16x128xbf16>, vector<128x128xbf16>, vector<16x128xf32> -> vector<16x128xf32>
    %c0_3 = arith.constant 0 : index
    %c0_4 = arith.constant 0 : index
    %3 = vector.load %arg3[%c0_3, %c0_4] : memref<128x128xbf16, #tpu.memory_space<vmem>>, vector<128x128xbf16>
    %4 = arith.truncf %2 : vector<16x128xf32> to vector<16x128xbf16>
    %cst_5 = arith.constant dense<0.000000e+00> : vector<16x128xf32>
    %5 = tpu.matmul %4, %3, %cst_5 {dimension_numbers = #tpu.dot_dimension_numbers<[1], [0], [0], [1], [0, 0, 1, 1], [], []>} : vector<16x128xbf16>, vector<128x128xbf16>, vector<16x128xf32> -> vector<16x128xf32>
    %c0_6 = arith.constant 0 : index
    %c0_7 = arith.constant 0 : index
    %6 = vector.load %arg4[%c0_6, %c0_7] : memref<1x128xf32, #tpu.memory_space<vmem>>, vector<1x128xf32>
    %7 = vector.broadcast %6 : vector<1x128xf32> to vector<16x128xf32>
    %8 = arith.addf %5, %7 : vector<16x128xf32>
    %cst_8 = arith.constant 0.000000e+00 : f32
    %9 = vector.broadcast %cst_8 : f32 to vector<16x128xf32>
    %10 = arith.maximumf %8, %9 : vector<16x128xf32>
    %c0_9 = arith.constant 0 : index
    %c0_10 = arith.constant 0 : index
    %11 = vector.load %arg5[%c0_9, %c0_10] : memref<128x128xbf16, #tpu.memory_space<vmem>>, vector<128x128xbf16>
    %12 = arith.truncf %10 : vector<16x128xf32> to vector<16x128xbf16>
    %cst_11 = arith.constant dense<0.000000e+00> : vector<16x128xf32>
    %13 = tpu.matmul %12, %11, %cst_11 {dimension_numbers = #tpu.dot_dimension_numbers<[1], [0], [0], [1], [0, 0, 1, 1], [], []>} : vector<16x128xbf16>, vector<128x128xbf16>, vector<16x128xf32> -> vector<16x128xf32>
    %c0_12 = arith.constant 0 : index
    %c0_13 = arith.constant 0 : index
    %14 = vector.load %arg6[%c0_12, %c0_13] : memref<1x128xf32, #tpu.memory_space<vmem>>, vector<1x128xf32>
    %15 = vector.broadcast %14 : vector<1x128xf32> to vector<16x128xf32>
    %16 = arith.addf %13, %15 : vector<16x128xf32>
    %cst_14 = arith.constant 0.000000e+00 : f32
    %17 = vector.broadcast %cst_14 : f32 to vector<16x128xf32>
    %18 = arith.maximumf %16, %17 : vector<16x128xf32>
    %c0_15 = arith.constant 0 : index
    %c0_16 = arith.constant 0 : index
    %19 = vector.load %arg7[%c0_15, %c0_16] : memref<128x128xbf16, #tpu.memory_space<vmem>>, vector<128x128xbf16>
    %20 = arith.truncf %18 : vector<16x128xf32> to vector<16x128xbf16>
    %cst_17 = arith.constant dense<0.000000e+00> : vector<16x128xf32>
    %21 = tpu.matmul %20, %19, %cst_17 {dimension_numbers = #tpu.dot_dimension_numbers<[1], [0], [0], [1], [0, 0, 1, 1], [], []>} : vector<16x128xbf16>, vector<128x128xbf16>, vector<16x128xf32> -> vector<16x128xf32>
    %c0_18 = arith.constant 0 : index
    %c0_19 = arith.constant 0 : index
    %22 = vector.load %arg8[%c0_18, %c0_19] : memref<1x128xf32, #tpu.memory_space<vmem>>, vector<1x128xf32>
    %23 = vector.broadcast %22 : vector<1x128xf32> to vector<16x128xf32>
    %24 = arith.addf %21, %23 : vector<16x128xf32>
    %c0_20 = arith.constant 0 : index
    %c0_21 = arith.constant 0 : index
    %25 = vector.load %arg9[%c0_20, %c0_21] : memref<16x128xf32, #tpu.memory_space<vmem>>, vector<16x128xf32>
    tpu.vector_store %arg9[%c0_20, %c0_21], %24 {strides = array<i32>} : memref<16x128xf32, #tpu.memory_space<vmem>>, vector<16x128xf32>,
    return
  }
  func.func @transform_0(%arg0: i32) -> (i32, i32) {
    %c0_i32 = arith.constant 0 : i32
    %c0_i32_0 = arith.constant 0 : i32
    return %arg0, %c0_i32 : i32, i32
  }
  func.func @transform_1(%arg0: i32) -> (i32, i32) {
    %c0_i32 = arith.constant 0 : i32
    %c0_i32_0 = arith.constant 0 : i32
    %c0_i32_1 = arith.constant 0 : i32
    return %c0_i32, %c0_i32_0 : i32, i32
  }
  func.func @transform_2(%arg0: i32) -> (i32, i32) {
    %c0_i32 = arith.constant 0 : i32
    %c0_i32_0 = arith.constant 0 : i32
    %c0_i32_1 = arith.constant 0 : i32
    return %c0_i32, %c0_i32_0 : i32, i32
  }
  func.func @transform_3(%arg0: i32) -> (i32, i32) {
    %c0_i32 = arith.constant 0 : i32
    %c0_i32_0 = arith.constant 0 : i32
    %c0_i32_1 = arith.constant 0 : i32
    return %c0_i32, %c0_i32_0 : i32, i32
  }
  func.func @transform_4(%arg0: i32) -> (i32, i32) {
    %c0_i32 = arith.constant 0 : i32
    %c0_i32_0 = arith.constant 0 : i32
    %c0_i32_1 = arith.constant 0 : i32
    return %c0_i32, %c0_i32_0 : i32, i32
  }
  func.func @transform_5(%arg0: i32) -> (i32, i32) {
    %c0_i32 = arith.constant 0 : i32
    %c0_i32_0 = arith.constant 0 : i32
    %c0_i32_1 = arith.constant 0 : i32
    return %c0_i32, %c0_i32_0 : i32, i32
  }
  func.func @transform_6(%arg0: i32) -> (i32, i32) {
    %c0_i32 = arith.constant 0 : i32
    %c0_i32_0 = arith.constant 0 : i32
    %c0_i32_1 = arith.constant 0 : i32
    return %c0_i32, %c0_i32_0 : i32, i32
  }
  func.func @transform_7(%arg0: i32) -> (i32, i32) {
    %c0_i32 = arith.constant 0 : i32
    %c0_i32_0 = arith.constant 0 : i32
    %c0_i32_1 = arith.constant 0 : i32
    return %c0_i32, %c0_i32_0 : i32, i32
  }
  func.func @transform_8(%arg0: i32) -> (i32, i32) {
    %c0_i32 = arith.constant 0 : i32
    %c0_i32_0 = arith.constant 0 : i32
    return %arg0, %c0_i32 : i32, i32
  }
}

</mosaic_0001>

<bundles_post_ra>
// kernel: gin_forward.2
= control target key start
LH: loop header
LB: loop body
LE: loop exit
PB: predicated region body
PF: predicated region fallthrough
CT: control target
= control target key end

     0   :  { %v531_v0 = vmov 0.0   ;;  %vm532_vm0 = vmmov 0   ;;  %s682_s1 = inlined_call_operand.vmem [shape: bf16[128,128], index: 1, kind: input, shape index: {}]   ;;  %s683_s2 = inlined_call_operand.vmem [shape: bf16[128,128], index: 2, kind: input, shape index: {}]   ;;  %s684_s0 = inlined_call_operand.vmem [shape: bf16[16,128], index: 0, kind: input, shape index: {}]   ;;  %s685_s4 = inlined_call_operand.vmem [shape: bf16[128,128], index: 4, kind: input, shape index: {}]   ;;  %s686_s3 = inlined_call_operand.vmem [shape: f32[1,128], index: 3, kind: input, shape index: {}]   ;;  %s687_s5 = inlined_call_operand.vmem [shape: f32[1,128], index: 5, kind: input, shape index: {}]   ;;  %s688_s6 = inlined_call_operand.vmem [shape: bf16[16,128], index: 6, kind: output, shape index: {}]  }
   0x1   :  { %444 = vmatprep.subr.bf16.mxu0 %v531_v0  ;;  %v506_v1 = vld [vmem:[%s682_s1 + $0x38] sm:$0xff]   ;;  %460 = vmatprep.mubr.msk.bf16.mxu0 %vm532_vm0, %v531_v0  ;;  %v507_v2 = vld [vmem:[%s682_s1 + $0x30] sm:$0xff]   ;;  %v508_v3 = vld [vmem:[%s682_s1 + $0x28] sm:$0xff]  }
   0x2   :  { %464 = vmatprep.subr.bf16.mxu1 %v531_v0  ;;  %480 = vmatprep.mubr.msk.bf16.mxu1 %vm532_vm0, %v531_v0  ;;  %v515_v4 = vld [vmem:[%s683_s2 + $0x38] sm:$0xff]   ;;  %v509_v5 = vld [vmem:[%s682_s1 + $0x20] sm:$0xff]   ;;  %v516_v6 = vld [vmem:[%s683_s2 + $0x30] sm:$0xff]  }
   0x3   :  { %445 = vmatpush3.bf16.msra.mxu0 %v506_v1  ;;  %465 = vmatpush3.bf16.msra.mxu1 %v515_v4  ;;  %v510_v7 = vld [vmem:[%s682_s1 + $0x18] sm:$0xff]   ;;  %v517_v8 = vld [vmem:[%s683_s2 + $0x28] sm:$0xff]   ;;  %v511_v9 = vld [vmem:[%s682_s1 + $0x10] sm:$0xff]  }
   0x4   :  { %446 = vmatprep.subr.bf16.mxu0 %v531_v0  ;;  %466 = vmatprep.subr.bf16.mxu1 %v531_v0  ;;  %v518_v10 = vld [vmem:[%s683_s2 + $0x20] sm:$0xff]   ;;  %v512_v11 = vld [vmem:[%s682_s1 + $0x8] sm:$0xff]   ;;  %v519_v12 = vld [vmem:[%s683_s2 + $0x18] sm:$0xff]  }
   0x5   :  { %v513_v13 = vld [vmem:[%s682_s1] sm:$0xff]   ;;  %v520_v14 = vld [vmem:[%s683_s2 + $0x10] sm:$0xff]   ;;  %v521_v16 = vld [vmem:[%s683_s2 + $0x8] sm:$0xff]  }
   0x6   :  { %v514_v15 = vld [vmem:[%s684_s0] sm:$0xff]   ;;  %v523_v18 = vld [vmem:[%s685_s4 + $0x38] sm:$0xff]   ;;  %v524_v19 = vld [vmem:[%s685_s4 + $0x30] sm:$0xff]  }
   0x7   :  { %447 = vmatpush3.bf16.msra.mxu0 %v507_v2  ;;  %467 = vmatpush3.bf16.msra.mxu1 %v516_v6  ;;  %v522_v17 = vld [vmem:[%s683_s2] sm:$0xff]   ;;  %v525_v20 = vld [vmem:[%s685_s4 + $0x28] sm:$0xff]   ;;  %v527_v22 = vld [vmem:[%s685_s4 + $0x18] sm:$0xff]  }
   0x8   :  { %448 = vmatprep.subr.bf16.mxu0 %v531_v0  ;;  %468 = vmatprep.subr.bf16.mxu1 %v531_v0  ;;  %v526_v21 = vld [vmem:[%s685_s4 + $0x20] sm:$0xff]   ;;  %v528_v28 = vld [vmem:[%s685_s4 + $0x10] sm:$0xff]   ;;  %v529_v29 = vld [vmem:[%s685_s4 + $0x8] sm:$0xff]  }
   0x9   :  { %v530_v30 = vld [vmem:[%s685_s4] sm:$0xff]  }
   0xa   :  { %v390_v31 = vld [vmem:[%s686_s3] ss:$0 sm:$0xff] }
   0xb   :  { %449 = vmatpush3.bf16.msra.mxu0 %v508_v3  ;;  %469 = vmatpush3.bf16.msra.mxu1 %v517_v8  ;;  %v399_v41 = vld [vmem:[%s687_s5] ss:$0 sm:$0xff] }
   0xc   :  { %450 = vmatprep.subr.bf16.mxu0 %v531_v0  ;;  %470 = vmatprep.subr.bf16.mxu1 %v531_v0 }
   0xf   :  { %451 = vmatpush3.bf16.msra.mxu0 %v509_v5  ;;  %471 = vmatpush3.bf16.msra.mxu1 %v518_v10 }
  0x10   :  { %452 = vmatprep.subr.bf16.mxu0 %v531_v0  ;;  %472 = vmatprep.subr.bf16.mxu1 %v531_v0 }
  0x13   :  { %453 = vmatpush3.bf16.msra.mxu0 %v510_v7  ;;  %473 = vmatpush3.bf16.msra.mxu1 %v519_v12 }
  0x14   :  { %454 = vmatprep.subr.bf16.mxu0 %v531_v0  ;;  %474 = vmatprep.subr.bf16.mxu1 %v531_v0 }
  0x17   :  { %455 = vmatpush3.bf16.msra.mxu0 %v511_v9  ;;  %475 = vmatpush3.bf16.msra.mxu1 %v520_v14 }
  0x18   :  { %456 = vmatprep.subr.bf16.mxu0 %v531_v0  ;;  %476 = vmatprep.subr.bf16.mxu1 %v531_v0 }
  0x1b   :  { %457 = vmatpush3.bf16.msra.mxu0 %v512_v11  ;;  %477 = vmatpush3.bf16.msra.mxu1 %v521_v16 }
  0x1c   :  { %458 = vmatprep.subr.bf16.mxu0 %v531_v0  ;;  %478 = vmatprep.subr.bf16.mxu1 %v531_v0 }
  0x1f   :  { %459 = vmatpush3.bf16.msra.mxu0 %v513_v13  ;;  %479 = vmatpush3.bf16.msra.mxu1 %v522_v17 }
  0x20   :  { %484 = vmatprep.subr.bf16.mxu0 %v531_v0 }
  0x22   :  { %461 = vmatmul.mubr.bf16.vlgmr.msra.gmra.mxu0 %v514_v15 }
  0x23   :  { %500 = vmatprep.mubr.msk.bf16.mxu0 %vm532_vm0, %v531_v0  ;;  %485 = vmatpush3.bf16.msra.mxu0 %v523_v18 }
  0x24   :  { %486 = vmatprep.subr.bf16.mxu0 %v531_v0 }
  0x27   :  { %487 = vmatpush3.bf16.msra.mxu0 %v524_v19 }
  0x28   :  { %488 = vmatprep.subr.bf16.mxu0 %v531_v0 }
  0x2b   :  { %489 = vmatpush3.bf16.msra.mxu0 %v525_v20 }
  0x2c   :  { %490 = vmatprep.subr.bf16.mxu0 %v531_v0 }
  0x2f   :  { %491 = vmatpush3.bf16.msra.mxu0 %v526_v21 }
  0x30   :  { %492 = vmatprep.subr.bf16.mxu0 %v531_v0 }
  0x33   :  { %493 = vmatpush3.bf16.msra.mxu0 %v527_v22 }
  0x34   :  { %494 = vmatprep.subr.bf16.mxu0 %v531_v0 }
  0x37   :  { %495 = vmatpush3.bf16.msra.mxu0 %v528_v28 }
  0x38   :  { %496 = vmatprep.subr.bf16.mxu0 %v531_v0 }
  0x3b   :  { %497 = vmatpush3.bf16.msra.mxu0 %v529_v29 }
  0x3c   :  { %498 = vmatprep.subr.bf16.mxu0 %v531_v0 }
  0x3f   :  { %499 = vmatpush3.bf16.msra.mxu0 %v530_v30 }
  0xe2   :  { %v130_v23 = vpop.f32.mrf.mxu0 }
  0xe4   :  { %v462_v24 = vpop.f32.mrf.mxu0 }
  0xe6   :  { %v133_v25 = vpop.f32.mrf.mxu0 }
  0xe7   :  { %v153_v26 = vpack.c.bf16 %v133_v25, %v130_v23 }
  0xe8   :  { %v463_v27 = vpop.f32.mrf.mxu0 }
  0xe9   :  { %481 = vmatmul.mubr.bf16.vlgmr.msra.gmra.mxu1 %v153_v26 }
 0x1a9   :  { %v243_v32 = vpop.f32.mrf.mxu1 }
 0x1aa   :  { %v244_v34 = vadd.f32 %v390_v31, %v243_v32 }
 0x1ab   :  { %v482_v33 = vpop.f32.mrf.mxu1 }
 0x1ac   :  { %v250_v38 = vmax.f32 %v244_v34, 0.0 }
 0x1ad   :  { %v246_v35 = vpop.f32.mrf.mxu1 }
 0x1ae   :  { %v247_v36 = vadd.f32 %v390_v31, %v246_v35 }
 0x1af   :  { %v483_v37 = vpop.f32.mrf.mxu1 }
 0x1b0   :  { %v251_v39 = vmax.f32 %v247_v36, 0.0 }
 0x1b2   :  { %v268_v40 = vpack.c.bf16 %v251_v39, %v250_v38 }
 0x1b4   :  { %501 = vmatmul.mubr.bf16.vlgmr.msra.gmra.mxu0 %v268_v40 }
 0x274   :  { %v358_v42 = vpop.f32.mrf.mxu0 }
 0x275   :  { %v359_v44 = vadd.f32 %v399_v41, %v358_v42 }
 0x276   :  { %v502_v43 = vpop.f32.mrf.mxu0 }
 0x277   :  { %v365_v48 = vmax.f32 %v359_v44, 0.0 }
 0x278   :  { %v361_v45 = vpop.f32.mrf.mxu0 }
 0x279   :  { %v362_v46 = vadd.f32 %v399_v41, %v361_v45 }
 0x27a   :  { %v503_v47 = vpop.f32.mrf.mxu0 }
 0x27b   :  { %v366_v49 = vmax.f32 %v362_v46, 0.0 }
 0x27d   :  { %v415_v50 = vpack.c.bf16 %v366_v49, %v365_v48 }
 0x27f   :  { %416 = vst [vmem:[%s688_s6] sm:$0xff] %v415_v50  }

// kernel: gin_forward.3
= control target key start
LH: loop header
LB: loop body
LE: loop exit
PB: predicated region body
PF: predicated region fallthrough
CT: control target
= control target key end

     0   :  { %v679_v0 = vmov 0.0   ;;  %vm680_vm0 = vmmov 0   ;;  %s880_s1 = inlined_call_operand.vmem [shape: bf16[128,128], index: 1, kind: input, shape index: {}]   ;;  %s881_s2 = inlined_call_operand.vmem [shape: bf16[128,128], index: 2, kind: input, shape index: {}]   ;;  %s882_s0 = inlined_call_operand.vmem [shape: bf16[16,128], index: 0, kind: input, shape index: {}]   ;;  %s883_s4 = inlined_call_operand.vmem [shape: bf16[128,128], index: 4, kind: input, shape index: {}]   ;;  %s884_s6 = inlined_call_operand.vmem [shape: bf16[128,128], index: 6, kind: input, shape index: {}]   ;;  %s885_s3 = inlined_call_operand.vmem [shape: f32[1,128], index: 3, kind: input, shape index: {}]   ;;  %s886_s5 = inlined_call_operand.vmem [shape: f32[1,128], index: 5, kind: input, shape index: {}]   ;;  %s887_s7 = inlined_call_operand.vmem [shape: f32[1,128], index: 7, kind: input, shape index: {}]   ;;  %s888_s8 = inlined_call_operand.vmem [shape: f32[16,128], index: 8, kind: output, shape index: {}]  }
   0x1   :  { %564 = vmatprep.subr.bf16.mxu0 %v679_v0  ;;  %v646_v1 = vld [vmem:[%s880_s1 + $0x38] sm:$0xff]   ;;  %580 = vmatprep.mubr.msk.bf16.mxu0 %vm680_vm0, %v679_v0  ;;  %v647_v2 = vld [vmem:[%s880_s1 + $0x30] sm:$0xff]   ;;  %v648_v3 = vld [vmem:[%s880_s1 + $0x28] sm:$0xff]  }
   0x2   :  { %584 = vmatprep.subr.bf16.mxu1 %v679_v0  ;;  %600 = vmatprep.mubr.msk.bf16.mxu1 %vm680_vm0, %v679_v0  ;;  %v655_v4 = vld [vmem:[%s881_s2 + $0x38] sm:$0xff]   ;;  %v649_v5 = vld [vmem:[%s880_s1 + $0x20] sm:$0xff]   ;;  %v656_v6 = vld [vmem:[%s881_s2 + $0x30] sm:$0xff]  }
   0x3   :  { %565 = vmatpush3.bf16.msra.mxu0 %v646_v1  ;;  %585 = vmatpush3.bf16.msra.mxu1 %v655_v4  ;;  %v650_v7 = vld [vmem:[%s880_s1 + $0x18] sm:$0xff]   ;;  %v657_v8 = vld [vmem:[%s881_s2 + $0x28] sm:$0xff]   ;;  %v651_v9 = vld [vmem:[%s880_s1 + $0x10] sm:$0xff]  }
   0x4   :  { %566 = vmatprep.subr.bf16.mxu0 %v679_v0  ;;  %586 = vmatprep.subr.bf16.mxu1 %v679_v0  ;;  %v658_v10 = vld [vmem:[%s881_s2 + $0x20] sm:$0xff]   ;;  %v652_v11 = vld [vmem:[%s880_s1 + $0x8] sm:$0xff]   ;;  %v659_v12 = vld [vmem:[%s881_s2 + $0x18] sm:$0xff]  }
   0x5   :  { %v653_v13 = vld [vmem:[%s880_s1] sm:$0xff]   ;;  %v660_v14 = vld [vmem:[%s881_s2 + $0x10] sm:$0xff]   ;;  %v661_v16 = vld [vmem:[%s881_s2 + $0x8] sm:$0xff]  }
   0x6   :  { %v654_v15 = vld [vmem:[%s882_s0] sm:$0xff]   ;;  %v663_v18 = vld [vmem:[%s883_s4 + $0x38] sm:$0xff]   ;;  %v664_v19 = vld [vmem:[%s883_s4 + $0x30] sm:$0xff]  }
   0x7   :  { %567 = vmatpush3.bf16.msra.mxu0 %v647_v2  ;;  %587 = vmatpush3.bf16.msra.mxu1 %v656_v6  ;;  %v662_v17 = vld [vmem:[%s881_s2] sm:$0xff]   ;;  %v665_v20 = vld [vmem:[%s883_s4 + $0x28] sm:$0xff]   ;;  %v667_v22 = vld [vmem:[%s883_s4 + $0x18] sm:$0xff]  }
   0x8   :  { %568 = vmatprep.subr.bf16.mxu0 %v679_v0  ;;  %588 = vmatprep.subr.bf16.mxu1 %v679_v0  ;;  %v666_v21 = vld [vmem:[%s883_s4 + $0x20] sm:$0xff]   ;;  %v668_v28 = vld [vmem:[%s883_s4 + $0x10] sm:$0xff]   ;;  %v669_v29 = vld [vmem:[%s883_s4 + $0x8] sm:$0xff]  }
   0x9   :  { %v670_v30 = vld [vmem:[%s883_s4] sm:$0xff]   ;;  %v671_v31 = vld [vmem:[%s884_s6 + $0x38] sm:$0xff]   ;;  %v672_v32 = vld [vmem:[%s884_s6 + $0x30] sm:$0xff]  }
   0xa   :  { %v673_v33 = vld [vmem:[%s884_s6 + $0x28] sm:$0xff]   ;;  %v674_v34 = vld [vmem:[%s884_s6 + $0x20] sm:$0xff]   ;;  %v675_v35 = vld [vmem:[%s884_s6 + $0x18] sm:$0xff]  }
   0xb   :  { %569 = vmatpush3.bf16.msra.mxu0 %v648_v3  ;;  %589 = vmatpush3.bf16.msra.mxu1 %v657_v8  ;;  %v501_v36 = vld [vmem:[%s885_s3] ss:$0 sm:$0xff]  ;;  %v676_v46 = vld [vmem:[%s884_s6 + $0x10] sm:$0xff]   ;;  %v677_v47 = vld [vmem:[%s884_s6 + $0x8] sm:$0xff]  }
   0xc   :  { %570 = vmatprep.subr.bf16.mxu0 %v679_v0  ;;  %590 = vmatprep.subr.bf16.mxu1 %v679_v0  ;;  %v678_v48 = vld [vmem:[%s884_s6] sm:$0xff]  }
   0xd   :  { %v510_v49 = vld [vmem:[%s886_s5] ss:$0 sm:$0xff] }
   0xe   :  { %v519_v59 = vld [vmem:[%s887_s7] ss:$0 sm:$0xff] }
   0xf   :  { %571 = vmatpush3.bf16.msra.mxu0 %v649_v5  ;;  %591 = vmatpush3.bf16.msra.mxu1 %v658_v10 }
  0x10   :  { %572 = vmatprep.subr.bf16.mxu0 %v679_v0  ;;  %592 = vmatprep.subr.bf16.mxu1 %v679_v0 }
  0x13   :  { %573 = vmatpush3.bf16.msra.mxu0 %v650_v7  ;;  %593 = vmatpush3.bf16.msra.mxu1 %v659_v12 }
  0x14   :  { %574 = vmatprep.subr.bf16.mxu0 %v679_v0  ;;  %594 = vmatprep.subr.bf16.mxu1 %v679_v0 }
  0x17   :  { %575 = vmatpush3.bf16.msra.mxu0 %v651_v9  ;;  %595 = vmatpush3.bf16.msra.mxu1 %v660_v14 }
  0x18   :  { %576 = vmatprep.subr.bf16.mxu0 %v679_v0  ;;  %596 = vmatprep.subr.bf16.mxu1 %v679_v0 }
  0x1b   :  { %577 = vmatpush3.bf16.msra.mxu0 %v652_v11  ;;  %597 = vmatpush3.bf16.msra.mxu1 %v661_v16 }
  0x1c   :  { %578 = vmatprep.subr.bf16.mxu0 %v679_v0  ;;  %598 = vmatprep.subr.bf16.mxu1 %v679_v0 }
  0x1f   :  { %579 = vmatpush3.bf16.msra.mxu0 %v653_v13  ;;  %599 = vmatpush3.bf16.msra.mxu1 %v662_v17 }
  0x20   :  { %604 = vmatprep.subr.bf16.mxu0 %v679_v0  ;;  %624 = vmatprep.subr.bf16.mxu1 %v679_v0 }
  0x22   :  { %581 = vmatmul.mubr.bf16.vlgmr.msra.gmra.mxu0 %v654_v15 }
  0x23   :  { %620 = vmatprep.mubr.msk.bf16.mxu0 %vm680_vm0, %v679_v0  ;;  %605 = vmatpush3.bf16.msra.mxu0 %v663_v18 }
  0x24   :  { %606 = vmatprep.subr.bf16.mxu0 %v679_v0 }
  0x27   :  { %607 = vmatpush3.bf16.msra.mxu0 %v664_v19 }
  0x28   :  { %608 = vmatprep.subr.bf16.mxu0 %v679_v0 }
  0x2b   :  { %609 = vmatpush3.bf16.msra.mxu0 %v665_v20 }
  0x2c   :  { %610 = vmatprep.subr.bf16.mxu0 %v679_v0 }
  0x2f   :  { %611 = vmatpush3.bf16.msra.mxu0 %v666_v21 }
  0x30   :  { %612 = vmatprep.subr.bf16.mxu0 %v679_v0 }
  0x33   :  { %613 = vmatpush3.bf16.msra.mxu0 %v667_v22 }
  0x34   :  { %614 = vmatprep.subr.bf16.mxu0 %v679_v0 }
  0x37   :  { %615 = vmatpush3.bf16.msra.mxu0 %v668_v28 }
  0x38   :  { %616 = vmatprep.subr.bf16.mxu0 %v679_v0 }
  0x3b   :  { %617 = vmatpush3.bf16.msra.mxu0 %v669_v29 }
  0x3c   :  { %618 = vmatprep.subr.bf16.mxu0 %v679_v0 }
  0x3f   :  { %619 = vmatpush3.bf16.msra.mxu0 %v670_v30 }
  0xe2   :  { %v136_v23 = vpop.f32.mrf.mxu0 }
  0xe4   :  { %v582_v24 = vpop.f32.mrf.mxu0 }
  0xe6   :  { %v139_v25 = vpop.f32.mrf.mxu0 }
  0xe7   :  { %v159_v26 = vpack.c.bf16 %v139_v25, %v136_v23 }
  0xe8   :  { %v583_v27 = vpop.f32.mrf.mxu0 }
  0xe9   :  { %601 = vmatmul.mubr.bf16.vlgmr.msra.gmra.mxu1 %v159_v26 }
  0xea   :  { %640 = vmatprep.mubr.msk.bf16.mxu1 %vm680_vm0, %v679_v0  ;;  %625 = vmatpush3.bf16.msra.mxu1 %v671_v31 }
  0xeb   :  { %626 = vmatprep.subr.bf16.mxu1 %v679_v0 }
  0xee   :  { %627 = vmatpush3.bf16.msra.mxu1 %v672_v32 }
  0xef   :  { %628 = vmatprep.subr.bf16.mxu1 %v679_v0 }
  0xf2   :  { %629 = vmatpush3.bf16.msra.mxu1 %v673_v33 }
  0xf3   :  { %630 = vmatprep.subr.bf16.mxu1 %v679_v0 }
  0xf6   :  { %631 = vmatpush3.bf16.msra.mxu1 %v674_v34 }
  0xf7   :  { %632 = vmatprep.subr.bf16.mxu1 %v679_v0 }
  0xfa   :  { %633 = vmatpush3.bf16.msra.mxu1 %v675_v35 }
  0xfb   :  { %634 = vmatprep.subr.bf16.mxu1 %v679_v0 }
  0xfe   :  { %635 = vmatpush3.bf16.msra.mxu1 %v676_v46 }
  0xff   :  { %636 = vmatprep.subr.bf16.mxu1 %v679_v0 }
 0x102   :  { %637 = vmatpush3.bf16.msra.mxu1 %v677_v47 }
 0x103   :  { %638 = vmatprep.subr.bf16.mxu1 %v679_v0 }
 0x106   :  { %639 = vmatpush3.bf16.msra.mxu1 %v678_v48 }
 0x1a9   :  { %v249_v37 = vpop.f32.mrf.mxu1 }
 0x1aa   :  { %v250_v39 = vadd.f32 %v501_v36, %v249_v37 }
 0x1ab   :  { %v602_v38 = vpop.f32.mrf.mxu1 }
 0x1ac   :  { %v256_v43 = vmax.f32 %v250_v39, 0.0 }
 0x1ad   :  { %v252_v40 = vpop.f32.mrf.mxu1 }
 0x1ae   :  { %v253_v41 = vadd.f32 %v501_v36, %v252_v40 }
 0x1af   :  { %v603_v42 = vpop.f32.mrf.mxu1 }
 0x1b0   :  { %v257_v44 = vmax.f32 %v253_v41, 0.0 }
 0x1b2   :  { %v274_v45 = vpack.c.bf16 %v257_v44, %v256_v43 }
 0x1b4   :  { %621 = vmatmul.mubr.bf16.vlgmr.msra.gmra.mxu0 %v274_v45 }
 0x274   :  { %v364_v50 = vpop.f32.mrf.mxu0 }
 0x275   :  { %v365_v52 = vadd.f32 %v510_v49, %v364_v50 }
 0x276   :  { %v622_v51 = vpop.f32.mrf.mxu0 }
 0x277   :  { %v371_v56 = vmax.f32 %v365_v52, 0.0 }
 0x278   :  { %v367_v53 = vpop.f32.mrf.mxu0 }
 0x279   :  { %v368_v54 = vadd.f32 %v510_v49, %v367_v53 }
 0x27a   :  { %v623_v55 = vpop.f32.mrf.mxu0 }
 0x27b   :  { %v372_v57 = vmax.f32 %v368_v54, 0.0 }
 0x27d   :  { %v389_v58 = vpack.c.bf16 %v372_v57, %v371_v56 }
 0x27f   :  { %641 = vmatmul.mubr.bf16.vlgmr.msra.gmra.mxu1 %v389_v58 }
 0x33f   :  { %v479_v60 = vpop.f32.mrf.mxu1 }
 0x340   :  { %v480_v61 = vadd.f32 %v519_v59, %v479_v60 }
 0x341   :  { %v642_v62 = vpop.f32.mrf.mxu1 }
 0x342   :  { %486 = vst [vmem:[%s888_s8] sm:$0xff] %v480_v61 }
 0x343   :  { %v482_v63 = vpop.f32.mrf.mxu1 }
 0x344   :  { %v483_v0 = vadd.f32 %v519_v59, %v482_v63 }
 0x345   :  { %v643_v1 = vpop.f32.mrf.mxu1 }
 0x346   :  { %487 = vst [vmem:[%s888_s8 + $0x8] sm:$0xff] %v483_v0 }

</bundles_post_ra>
